<compile_context>
chip_gen: v7x
topology: tpu7x:2x2x1
jax: 0.10.0
libtpu: 0.0.40
codegen_flags: <defaults>
</compile_context>

<pallas_src>
import functools

import jax
import jax.numpy as jnp
from jax.experimental import pallas as pl
from jax.experimental.pallas import tpu as pltpu


def _resize_crop_kernel(wy_ref, wxp_ref, img_ref, out_ref):
    # wy_ref : (size, H)  f32   (resident)
    # wxp_ref: (W, P)     f32   (resident; columns >= size are zero padding)
    # img_ref: (B, H, W)  bf16  (per-step block)
    # out_ref: (B, size, P) f32 (per-step block)
    B, H, W = img_ref.shape
    # One large MXU matmul for the width contraction: (B*H, W) @ (W, P).
    img = img_ref[...].astype(jnp.float32).reshape(B * H, W)
    t = jnp.dot(img, wxp_ref[...], preferred_element_type=jnp.float32)  # (B*H, P)
    wy = wy_ref[...]
    # Height contraction per plane; each store is a lane-dense (size, P) slab.
    for b in range(B):
        tb = t[b * H:(b + 1) * H, :]                                     # (H, P)
        out_ref[b] = jnp.dot(wy, tb,
                             preferred_element_type=jnp.float32).astype(out_ref.dtype)


def _interp_matrix(out_size: int, in_size: int, resized_size, crop_off):
    """Bilinear interpolation matrix (out_size, in_size), fully traced.

    Row j maps output pixel j (in the cropped, resized image) back to source
    coordinates using half-pixel-center convention (align_corners=False).
    `resized_size` / `crop_off` may be traced scalars; shapes are static.
    """
    s = resized_size / in_size
    j = jnp.arange(out_size, dtype=jnp.float32)
    src = (crop_off + j + 0.5) / s - 0.5
    src = jnp.clip(src, 0.0, in_size - 1.0)
    i0 = jnp.floor(src)
    w = src - i0
    i0i = i0.astype(jnp.int32)
    i1i = jnp.minimum(i0i + 1, in_size - 1)
    oh0 = jax.nn.one_hot(i0i, in_size, dtype=jnp.float32)
    oh1 = jax.nn.one_hot(i1i, in_size, dtype=jnp.float32)
    return (1.0 - w)[:, None] * oh0 + w[:, None] * oh1


def _sample_params(key, H: int, W: int, size: int, scale):
    """Traced random (resized_h, resized_w, top, left) — no host sync."""
    k_s, k_t, k_l = jax.random.split(key, 3)
    lo, hi = float(min(scale)), float(max(scale))
    s = jax.random.uniform(k_s, (), jnp.float32, minval=lo, maxval=hi)
    rh = jnp.maximum(jnp.round(H * s), float(size))
    rw = jnp.maximum(jnp.round(W * s), float(size))
    top = jnp.floor(jax.random.uniform(k_t, (), jnp.float32) * (rh - size + 1.0))
    left = jnp.floor(jax.random.uniform(k_l, (), jnp.float32) * (rw - size + 1.0))
    return rh, rw, top, left


def _planes_per_block(nc: int, h: int, w: int, size: int, p_pad: int) -> int:
    """Biggest plane-batch that fits a conservative VMEM budget."""
    per_plane = (h * w * 2) * 2          # bf16 img block, double-buffered
    per_plane += h * w * 4               # in-kernel f32 upcast of the block
    per_plane += h * p_pad * 4           # width-contraction intermediate rows
    per_plane += size * p_pad * 4 * 2    # f32 out block, double-buffered
    budget = 24 * 1024 * 1024            # leave headroom vs. 48 MiB vmem limit
    b = max(1, min(budget // per_plane, 32, nc))
    if nc >= 2:
        # keep >= 2 grid steps so a 2-TensorCore chip (v7x) can shard the axis
        b = min(b, pl.cdiv(nc, 2))
    return int(b)


@functools.partial(jax.jit, static_argnames=("size", "scale"))
def random_resize_crop_pallas(img, key, *, size: int, scale):
    """img: (N, C, H, W) float32 -> (N, C, size, size) float32."""
    N, C, H, W = img.shape
    NC = N * C
    p_pad = -(-size // 128) * 128        # lane-dense output width

    rh, rw, top, left = _sample_params(key, H, W, size, scale)
    wy = _interp_matrix(size, H, rh, top)      # (size, H) f32
    wx = _interp_matrix(size, W, rw, left)     # (size, W) f32
    # Zero-padded, transposed Wx so the kernel's first matmul is (B*H, W)@(W, P)
    wxp = jnp.zeros((W, p_pad), jnp.float32).at[:, :size].set(wx.T)

    # bf16 input halves the HBM->VMEM DMA bytes; weights/accumulation stay f32.
    img_flat = img.reshape(NC, H, W).astype(jnp.bfloat16)

    B = _planes_per_block(NC, H, W, size, p_pad)
    grid = (pl.cdiv(NC, B),)

    out_pad = pl.pallas_call(
        _resize_crop_kernel,
        out_shape=jax.ShapeDtypeStruct((NC, size, p_pad), jnp.float32),
        grid_spec=pltpu.PrefetchScalarGridSpec(
            num_scalar_prefetch=0,
            grid=grid,
            in_specs=[
                pl.BlockSpec((size, H), lambda i: (0, 0)),       # Wy, resident
                pl.BlockSpec((W, p_pad), lambda i: (0, 0)),      # Wx^T pad, resident
                pl.BlockSpec((B, H, W), lambda i: (i, 0, 0)),    # B planes / step
            ],
            out_specs=pl.BlockSpec((B, size, p_pad), lambda i: (i, 0, 0)),
        ),
        compiler_params=pltpu.CompilerParams(
            dimension_semantics=("parallel",),
            vmem_limit_bytes=48 * 1024 * 1024,
        ),
    )(wy, wxp, img_flat)

    return out_pad[:, :, :size].reshape(N, C, size, size)


if __name__ == "__main__":
    key = jax.random.PRNGKey(0)
    k_img, k_aug = jax.random.split(key)

    N, C, H, W = 2, 4, 16, 16
    size = 8
    scale = (0.8, 1.0)

    img = jax.random.normal(k_img, (N, C, H, W), dtype=jnp.float32)

    out = random_resize_crop_pallas(img, k_aug, size=size, scale=scale)
    out = jax.block_until_ready(out)

    assert out.shape == (N, C, size, size), out.shape
    assert out.dtype == jnp.float32, out.dtype
    assert bool(jnp.all(jnp.isfinite(out)))

    # Plain-JAX reference of the same math (same traced random params).
    rh, rw, top, left = _sample_params(k_aug, H, W, size, scale)
    wy_ref = _interp_matrix(size, H, rh, top)
    wx_ref = _interp_matrix(size, W, rw, left)
    ref = jnp.einsum("oh,nchw,pw->ncop", wy_ref, img, wx_ref)
    max_err = float(jnp.max(jnp.abs(out - ref)))
    assert max_err < 5e-2, max_err  # tolerance covers bf16 image rounding

    print("KERNEL_OK")
</pallas_src>

<mosaic_0001>
module attributes {stable_mosaic.version = 11 : i64} {
  func.func @_resize_crop_kernel(%arg0: i32, %arg1: memref<8x16xf32, #tpu.memory_space<vmem>>, %arg2: memref<16x128xf32, #tpu.memory_space<vmem>>, %arg3: memref<4x16x16xbf16, #tpu.memory_space<vmem>>, %arg4: memref<4x8x128xf32, #tpu.memory_space<vmem>>) attributes {dimension_semantics = [#tpu.dimension_semantics<parallel>], iteration_bounds = array<i64: 2>, scalar_prefetch = 0 : i64, scratch_operands = 0 : i64, tpu.core_type = #tpu.core_type<tc>, window_params = [{pipeline_mode = #tpu.pipeline_mode<synchronous>, transform_indices = @transform_0, window_bounds = array<i64: 8, 16>}, {pipeline_mode = #tpu.pipeline_mode<synchronous>, transform_indices = @transform_1, window_bounds = array<i64: 16, 128>}, {transform_indices = @transform_2, window_bounds = array<i64: 4, 16, 16>}, {transform_indices = @transform_3, window_bounds = array<i64: 4, 8, 128>}]} {
    %c0 = arith.constant 0 : index
    %c0_0 = arith.constant 0 : index
    %c0_1 = arith.constant 0 : index
    %0 = vector.load %arg3[%c0, %c0_0, %c0_1] : memref<4x16x16xbf16, #tpu.memory_space<vmem>>, vector<4x16x16xbf16>
    %1 = arith.extf %0 : vector<4x16x16xbf16> to vector<4x16x16xf32>
    %2 = vector.shape_cast %1 : vector<4x16x16xf32> to vector<64x16xf32>
    %c0_2 = arith.constant 0 : index
    %c0_3 = arith.constant 0 : index
    %3 = vector.load %arg2[%c0_2, %c0_3] : memref<16x128xf32, #tpu.memory_space<vmem>>, vector<16x128xf32>
    %cst = arith.constant dense<0.000000e+00> : vector<64x128xf32>
    %4 = tpu.matmul %2, %3, %cst {dimension_numbers = #tpu.dot_dimension_numbers<[1], [0], [0], [1], [0, 0, 1, 1], [], []>} : vector<64x16xf32>, vector<16x128xf32>, vector<64x128xf32> -> vector<64x128xf32>
    %c0_4 = arith.constant 0 : index
    %c0_5 = arith.constant 0 : index
    %5 = vector.load %arg1[%c0_4, %c0_5] : memref<8x16xf32, #tpu.memory_space<vmem>>, vector<8x16xf32>
    %6 = vector.extract_strided_slice %4 {offsets = [0, 0], sizes = [16, 128], strides = [1, 1]} : vector<64x128xf32> to vector<16x128xf32>
    %cst_6 = arith.constant dense<0.000000e+00> : vector<8x128xf32>
    %7 = tpu.matmul %5, %6, %cst_6 {dimension_numbers = #tpu.dot_dimension_numbers<[1], [0], [0], [1], [0, 0, 1, 1], [], []>} : vector<8x16xf32>, vector<16x128xf32>, vector<8x128xf32> -> vector<8x128xf32>
    %c0_7 = arith.constant 0 : index
    %c0_8 = arith.constant 0 : index
    %c0_9 = arith.constant 0 : index
    %8 = vector.load %arg4[%c0_7, %c0_8, %c0_9] : memref<4x8x128xf32, #tpu.memory_space<vmem>>, vector<1x8x128xf32>
    %9 = vector.shape_cast %8 : vector<1x8x128xf32> to vector<8x128xf32>
    %10 = vector.shape_cast %7 : vector<8x128xf32> to vector<1x8x128xf32>
    tpu.vector_store %arg4[%c0_7, %c0_8, %c0_9], %10 {strides = array<i32>} : memref<4x8x128xf32, #tpu.memory_space<vmem>>, vector<1x8x128xf32>,
    %11 = vector.extract_strided_slice %4 {offsets = [16, 0], sizes = [16, 128], strides = [1, 1]} : vector<64x128xf32> to vector<16x128xf32>
    %cst_10 = arith.constant dense<0.000000e+00> : vector<8x128xf32>
    %12 = tpu.matmul %5, %11, %cst_10 {dimension_numbers = #tpu.dot_dimension_numbers<[1], [0], [0], [1], [0, 0, 1, 1], [], []>} : vector<8x16xf32>, vector<16x128xf32>, vector<8x128xf32> -> vector<8x128xf32>
    %c1 = arith.constant 1 : index
    %c0_11 = arith.constant 0 : index
    %c0_12 = arith.constant 0 : index
    %13 = vector.load %arg4[%c1, %c0_11, %c0_12] : memref<4x8x128xf32, #tpu.memory_space<vmem>>, vector<1x8x128xf32>
    %14 = vector.shape_cast %13 : vector<1x8x128xf32> to vector<8x128xf32>
    %15 = vector.shape_cast %12 : vector<8x128xf32> to vector<1x8x128xf32>
    tpu.vector_store %arg4[%c1, %c0_11, %c0_12], %15 {strides = array<i32>} : memref<4x8x128xf32, #tpu.memory_space<vmem>>, vector<1x8x128xf32>,
    %16 = vector.extract_strided_slice %4 {offsets = [32, 0], sizes = [16, 128], strides = [1, 1]} : vector<64x128xf32> to vector<16x128xf32>
    %cst_13 = arith.constant dense<0.000000e+00> : vector<8x128xf32>
    %17 = tpu.matmul %5, %16, %cst_13 {dimension_numbers = #tpu.dot_dimension_numbers<[1], [0], [0], [1], [0, 0, 1, 1], [], []>} : vector<8x16xf32>, vector<16x128xf32>, vector<8x128xf32> -> vector<8x128xf32>
    %c2 = arith.constant 2 : index
    %c0_14 = arith.constant 0 : index
    %c0_15 = arith.constant 0 : index
    %18 = vector.load %arg4[%c2, %c0_14, %c0_15] : memref<4x8x128xf32, #tpu.memory_space<vmem>>, vector<1x8x128xf32>
    %19 = vector.shape_cast %18 : vector<1x8x128xf32> to vector<8x128xf32>
    %20 = vector.shape_cast %17 : vector<8x128xf32> to vector<1x8x128xf32>
    tpu.vector_store %arg4[%c2, %c0_14, %c0_15], %20 {strides = array<i32>} : memref<4x8x128xf32, #tpu.memory_space<vmem>>, vector<1x8x128xf32>,
    %21 = vector.extract_strided_slice %4 {offsets = [48, 0], sizes = [16, 128], strides = [1, 1]} : vector<64x128xf32> to vector<16x128xf32>
    %cst_16 = arith.constant dense<0.000000e+00> : vector<8x128xf32>
    %22 = tpu.matmul %5, %21, %cst_16 {dimension_numbers = #tpu.dot_dimension_numbers<[1], [0], [0], [1], [0, 0, 1, 1], [], []>} : vector<8x16xf32>, vector<16x128xf32>, vector<8x128xf32> -> vector<8x128xf32>
    %c3 = arith.constant 3 : index
    %c0_17 = arith.constant 0 : index
    %c0_18 = arith.constant 0 : index
    %23 = vector.load %arg4[%c3, %c0_17, %c0_18] : memref<4x8x128xf32, #tpu.memory_space<vmem>>, vector<1x8x128xf32>
    %24 = vector.shape_cast %23 : vector<1x8x128xf32> to vector<8x128xf32>
    %25 = vector.shape_cast %22 : vector<8x128xf32> to vector<1x8x128xf32>
    tpu.vector_store %arg4[%c3, %c0_17, %c0_18], %25 {strides = array<i32>} : memref<4x8x128xf32, #tpu.memory_space<vmem>>, vector<1x8x128xf32>,
    return
  }
  func.func @transform_0(%arg0: i32) -> (i32, i32) {
    %c0_i32 = arith.constant 0 : i32
    %c0_i32_0 = arith.constant 0 : i32
    %c0_i32_1 = arith.constant 0 : i32
    return %c0_i32, %c0_i32_0 : i32, i32
  }
  func.func @transform_1(%arg0: i32) -> (i32, i32) {
    %c0_i32 = arith.constant 0 : i32
    %c0_i32_0 = arith.constant 0 : i32
    %c0_i32_1 = arith.constant 0 : i32
    return %c0_i32, %c0_i32_0 : i32, i32
  }
  func.func @transform_2(%arg0: i32) -> (i32, i32, i32) {
    %c0_i32 = arith.constant 0 : i32
    %c0_i32_0 = arith.constant 0 : i32
    %c0_i32_1 = arith.constant 0 : i32
    return %arg0, %c0_i32, %c0_i32_0 : i32, i32, i32
  }
  func.func @transform_3(%arg0: i32) -> (i32, i32, i32) {
    %c0_i32 = arith.constant 0 : i32
    %c0_i32_0 = arith.constant 0 : i32
    %c0_i32_1 = arith.constant 0 : i32
    return %arg0, %c0_i32, %c0_i32_0 : i32, i32, i32
  }
}

</mosaic_0001>

<bundles_post_ra>
// kernel: random_resize_crop_pallas.1
= control target key start
LH: loop header
LB: loop body
LE: loop exit
PB: predicated region body
PF: predicated region fallthrough
CT: control target
= control target key end

     0   :  { %8 = vsyncpa [#allocation3], 0  ;;  %s1082_s0 = inlined_call_operand.vmem [shape: f32[8,16], index: 0, kind: input, shape index: {}]   ;;  %s1083_s1 = inlined_call_operand.vmem [shape: f32[16,128], index: 1, kind: input, shape index: {}]   ;;  %s1084_s2 = inlined_call_operand.vmem [shape: bf16[8,16,16], index: 2, kind: input, shape index: {}]   ;;  %s1085_s3 = inlined_call_operand.hbm [shape: f32[8,8,128], index: 3, kind: output, shape index: {}]  }
   0x1   :  { %10 = vsyncpa [#allocation3 + $0x1], 0  ;;  %s955_s12 = smov 0   ;;  %s957_s13 = smov 0  }
   0x2   :  { %s959_s14 = smov 0   ;;  %s961_s15 = smov 0  }
   0x3 LB: > { %s976_s16 = sadd.s32 4294967295, %s927_s15   ;;  %s690_s17 = sadd.s32 4294967294, %s927_s15   ;;  %s927_s15 = sphi %s961_s15, %s1091_s15   ;;  %s923_s14 = sphi %s959_s14, %s1090_s14   ;;  %s919_s13 = sphi %s957_s13, %s1089_s13   ;;  %s915_s12 = sphi %s955_s12, %s1088_s12  }
   0x4   : > { %s980_s18 = sadd.s32 1, %s927_s15   ;;  %s91_s19 = sadd.s32 1, %s923_s14 }
   0x5   : > { %s88_s20 = ssub.s32 %s927_s15, %s980_s18  ;;  %p101_p0 = scmp.ne.s32.totalorder %s923_s14, %s919_s13 }
   0x6   : > { %p89_p1 = scmp.eq.s32.totalorder %s88_s20, 0  ;;  %p102_p2 = scmp.eq.s32.totalorder %s976_s16, 1 }
   0x7   : > { %p107_p3 = scmp.ne.s32.totalorder %s919_s13, %s915_s12  ;;  %p108_p4 = scmp.eq.s32.totalorder %s690_s17, 1 }
   0x8   : > { %s991_s21 = scalar_select %p89_p1, %s923_s14, %s91_s19  }
   0x9   : > { %p993_p5 = por %p102_p2, %p101_p0  ;;  %p997_p6 = por %p108_p4, %p107_p3 }
   0xa   : > { %p693_p7 = scmp.ge.s32.totalorder %s927_s15, 1  ;;  %p142_p8 = scmp.lt.s32.totalorder %s927_s15, 3 }
   0xc   : > { %p143_p9 = pnand %p693_p7, %p142_p8 }
   0xd   : > { %v191_v0 = vld [vmem:[%s1083_s1] sm:$0xff] (!%p143_p9)  ;;  %v192_v1 = vld [vmem:[%s1083_s1 + $0x8] sm:$0xff] (!%p143_p9)  ;;  %s695_s28 = sshll.u32 (!%p143_p9), %s976_s16, 2  ;;  %vm193_vm0 = vcmask (!%p143_p9), 130048   ;;  %v929_v15 = vmov (!%p143_p9), 0.0|0.0   ;;  %vm930_vm1 = vmmov (!%p143_p9), 0  }
   0xe   : > { %146 = sbr.rel (%p143_p9) target bundleno = 485 (0x1e5), region = 32  ;;  %v805_v2 = vpack.c.bf16 (!%p143_p9), %v192_v1, %v191_v0  ;;  %p168_p10 = scmp.lt.s32.totalorder (!%p143_p9), %s695_s28, 7  ;;  %809 = vmatprep.subr.bf16.mxu1 (!%p143_p9), %v929_v15  ;;  %v931_v16 = vmov (!%p143_p9), 0.0   ;;  %v323_v21 = vld [vmem:[%s1082_s0] sm:$0xff] (!%p143_p9) }
   0xf   : > { %781 = vmatprep.mubr.msk.f32.mxu1 (!%p143_p9), %vm930_vm1, %v931_v16  ;;  %s164_s8 = sand.u32 (!%p143_p9), 1, %s919_s13   ;;  %s719_s17 = sshll.u32 (!%p143_p9), %s976_s16, 9 }
  0x10   : > { %806 = vmatprep.subr.bf16.mxu0 (!%p143_p9), %v805_v2  ;;  %s694_s9 = sshll.u32 (!%p143_p9), %s164_s8, 5  ;;  %s1039_s24 = scalar_lea.hbm (!%p143_p9), %s1085_s3, %s719_s17 }
  0x11   : > { %808 = vmatpush3.bf16.msra.mxu0 (!%p143_p9), %v805_v2  ;;  %s166_s10 = scalar_lea.vmem (!%p143_p9), [#allocation2], %s694_s9  ;;  %s1041_s25 = scalar_lea.sflag (!%p143_p9), [#allocation3], %s164_s8 }
  0x12   : > { %s628_s11 = sshll.u32 (!%p143_p9), %s166_s10, 4  ;;  %s932_s16 = smov (!%p143_p9), [#allocation2]   ;;  %s1034_s11 = int_to_ptr.vmem [resolvable:$true] %s628_s11 }
  0x13   : > { %s865_s26 = scalar_lea.vmem (!%p143_p9), %s1034_s11, 512  ;;  %s869_s27 = sshll.u32 (!%p143_p9), %s932_s16, 4  ;;  %s870_s27 = int_to_ptr.vmem [resolvable:$false] %s869_s27 }
  0x14   : > { %p866_p11 = scmp.ne.s32.totalorder (!%p143_p9), %s1034_s11, %s865_s26  ;;  %p872_p0 = scmp.lt.s32.totalorder (!%p143_p9), %s1034_s11, %s870_s27 }
  0x15   : > { %s1093_s28 = smov (!%p168_p10, %s695_s28), 7 }
  0x16   : > { %s718_s29 = sshll.u32 %s1093_s28, 3  ;;  %p867_p12 = pnand %p866_p11, %p993_p5 }
  0x17   : > { %s172_s5 = scalar_lea.vmem %s1084_s2, %s718_s29  ;;  %s871_s28 = scalar_lea.vmem %s870_s27, 1024 }
  0x18   : > { %v721_v3 = vld [vmem:[%s172_s5] sm:$0xff]   ;;  %v736_v4 = vld [vmem:[%s172_s5 + $0x8] sm:$0xff]   ;;  %v737_v8 = vld [vmem:[%s172_s5 + $0x10] sm:$0xff]   ;;  %p868_p13 = pneg %p867_p12  ;;  %p873_p1 = scmp.lt.s32.totalorder %s871_s28, %s865_s26 }
  0x19   : > { %v722_v5 = vunpack.c.l.bf16 %v721_v3  ;;  %v723_v6 = vunpack.c.h.bf16 %v721_v3  ;;  %v726_v7 = vunpack.c.l.bf16 %v736_v4  ;;  %v727_v9 = vunpack.c.h.bf16 %v736_v4  ;;  %v738_v11 = vld [vmem:[%s172_s5 + $0x18] sm:$0xff]  }
  0x1a   : > { %v730_v10 = vunpack.c.l.bf16 %v737_v8  ;;  %v731_v12 = vunpack.c.h.bf16 %v737_v8  ;;  %v734_v13 = vunpack.c.l.bf16 %v738_v11  ;;  %v735_v14 = vunpack.c.h.bf16 %v738_v11  ;;  %p874_p2 = por %p873_p1, %p872_p0 }
  0x1b   : > { %765 = vmatprep.mubr.msk.f32.mxu0 %vm193_vm0, %v722_v5 }
  0x1c   : > { %766 = vmatmul.mubr.msk.f32.vlgmr.msra.gmra.mrb[0].mxu0 %vm193_vm0, %v723_v6  ;;  %p875_p3 = pnand %p874_p2, %p868_p13 }
  0x1d   : > { %768 = vmatprep.mubr.msk.f32.mxu0 %vm193_vm0, %v726_v7 }
  0x20   : > { %769 = vmatmul.mubr.msk.f32.gmra.mrb[2].mxu0 %vm193_vm0, %v727_v9 }
  0x21   : > { %771 = vmatprep.mubr.msk.f32.mxu0 %vm193_vm0, %v730_v10 }
  0x24   : > { %772 = vmatmul.mubr.msk.f32.gmra.mrb[4].mxu0 %vm193_vm0, %v731_v12 }
  0x25   : > { %774 = vmatprep.mubr.msk.f32.mxu0 %vm193_vm0, %v734_v13 }
  0x28   : > { %775 = vmatmul.mubr.msk.f32.gmra.mrb[6].mxu0 %vm193_vm0, %v735_v14 }
  0xef   : > { %v767_v17 = vpop.f32.mrb[0].mxu0 }
  0xf0   : > { %v284_v18 = vpop.f32.mrb[1].mxu0 }
  0xf1   : > { %v810_v19 = vpack.c.bf16 %v767_v17, %v284_v18 }
  0xf3   : > { %v770_v20 = vpop.f32.mrb[2].mxu0  ;;  %811 = vmatpush3.bf16.msra.mxu1 %v810_v19 }
  0xf4   : > { %v294_v22 = vpop.f32.mrb[3].mxu0  ;;  %812 = vmatprep.subr.bf16.mxu1 %v929_v15 }
  0xf5   : > { %v813_v23 = vpack.c.bf16 %v770_v20, %v294_v22 }
  0xf6   : > { %782 = vmatmul.mubr.msk.f32.vlgmr.msra.gmra.mrb[0].mxu1 %vm193_vm0, %v323_v21 }
  0xf7   : > { %v773_v24 = vpop.f32.mrb[4].mxu0  ;;  %814 = vmatpush3.bf16.msra.mxu1 %v813_v23  ;;  %788 = vmatprep.mubr.msk.f32.mxu1 %vm930_vm1, %v931_v16 }
  0xf8   : > { %v304_v25 = vpop.f32.mrb[5].mxu0  ;;  %815 = vmatprep.subr.bf16.mxu1 %v929_v15 }
  0xf9   : > { %v816_v26 = vpack.c.bf16 %v773_v24, %v304_v25 }
  0xfa   : > { %789 = vmatmul.mubr.msk.f32.vlgmr.msra.gmra.mrb[2].mxu1 %vm193_vm0, %v323_v21 }
  0xfb   : > { %v776_v27 = vpop.f32.mrb[6].mxu0  ;;  %817 = vmatpush3.bf16.msra.mxu1 %v816_v26  ;;  %795 = vmatprep.mubr.msk.f32.mxu1 %vm930_vm1, %v931_v16 }
  0xfc   : > { %v314_v28 = vpop.f32.mrb[7].mxu0  ;;  %818 = vmatprep.subr.bf16.mxu1 %v929_v15 }
  0xfd   : > { %v819_v29 = vpack.c.bf16 %v776_v27, %v314_v28 }
  0xfe   : > { %796 = vmatmul.mubr.msk.f32.vlgmr.msra.gmra.mrb[4].mxu1 %vm193_vm0, %v323_v21 }
  0xff   : > { %820 = vmatpush3.bf16.msra.mxu1 %v819_v29  ;;  %802 = vmatprep.mubr.msk.f32.mxu1 %vm930_vm1, %v931_v16 }
 0x102   : > { %803 = vmatmul.mubr.msk.f32.vlgmr.msra.gmra.mrb[6].mxu1 %vm193_vm0, %v323_v21 }
 0x1c9   : > { %v393_v30 = vpop.f32.mrb[0].mxu1 }
 0x1ca   : > { %397 = vst [vmem:[%s166_s10] sm:$0xff] %v393_v30  ;;  %v783_v31 = vpop.f32.mrb[1].mxu1 }
 0x1cd   : > { %v464_v32 = vpop.f32.mrb[2].mxu1 }
 0x1ce   : > { %708 = vst [vmem:[%s166_s10 + $0x8] sm:$0xff] %v464_v32  ;;  %v790_v33 = vpop.f32.mrb[3].mxu1 }
 0x1d1   : > { %v536_v34 = vpop.f32.mrb[4].mxu1 }
 0x1d2   : > { %710 = vst [vmem:[%s166_s10 + $0x10] sm:$0xff] %v536_v34  ;;  %v797_v35 = vpop.f32.mrb[5].mxu1 }
 0x1d5   : > { %v608_v36 = vpop.f32.mrb[6].mxu1 }
 0x1d6   : > { %712 = vst [vmem:[%s166_s10 + $0x18] sm:$0xff] %v608_v36  ;;  %v804_v37 = vpop.f32.mrb[7].mxu1 }
 0x1d7   : > { %878 = shalt.err (!%p875_p3)
}
 0x1d8   : > { %s879_s29 = scalar_lea.hbm %s1039_s24, 512  ;;  %s883_s5 = scalar_lea.hbm %s1085_s3, 1024 }
 0x1d9   : > { %p880_p4 = scmp.ne.s32.totalorder %s1039_s24, %s879_s29  ;;  %p884_p9 = scmp.lt.u32.totalorder %s1039_s24, %s1085_s3 }
 0x1da   : > { %p885_p10 = scmp.lt.u32.totalorder %s883_s5, %s879_s29  ;;  %p887_p12 = scmp.lt.u32.totalorder %s879_s29, %s1039_s24 }
 0x1db   : > { %p881_p7 = pnand %p880_p4, %p993_p5 }
 0x1dc   : > { %p886_p11 = por %p885_p10, %p884_p9 }
 0x1dd   : > { %p882_p8 = pneg %p881_p7 }
 0x1de   : > { %p888_p13 = por %p887_p12, %p886_p11 }
 0x1e0   : > { %p889_p0 = pnand %p888_p13, %p882_p8 }
 0x1e2   : > { %892 = shalt.err (!%p889_p0)
}
 0x1e3   : > { %s933_s8 = smov 128   ;;  %s934_s9 = smov 8  }
 0x1e4   : > { %821 = dma.vmem_to_hbm [thread:$0]  (%p993_p5), %s1034_s11, 512, %s1039_s24, %s1041_s25, %s933_s8, %s933_s8, %s934_s9  }
 0x1e5 PF: > { %p827_p1 = scmp.ge.s32.totalorder %s927_s15, 2  ;;  %s643_s10 = sand.u32 1, %s915_s12  }
 0x1e6   : > { %s644_s17 = scalar_lea.sflag [#allocation3], %s643_s10 }
 0x1e7   : > { %p824_p2 = pnand %p827_p1, %p997_p6 }
 0x1e9   : > { %910 = dma.done.wait (!%p824_p2), %s644_s17, 512  }
 0x1ea   : > { %912 = vsyncadd (!%p824_p2), %s644_s17, 4294966784  ;;  %p13_p3 = scmp.ge.s32.totalorder %s980_s18, 4   ;;  %s1088_s12 = smov %s919_s13 }
 0x1eb   : > { %s1089_s13 = smov %s923_s14  ;;  %s1090_s14 = smov %s991_s21 }
 0x1ec   : > { %s1091_s15 = smov %s980_s18  ;;  %15 = sbr.rel (!%p13_p3) target bundleno = 3 (0x3), region = 70 }
 0x1f3   :  { %649 = vsyncpa [#allocation3], 1 }
 0x1f4   :  { %651 = vsyncpa [#allocation3 + $0x1], 1 }

</bundles_post_ra>
